<compile_context>
chip_gen: v7x
topology: tpu7x:2x2x1
jax: 0.10.0
libtpu: 0.0.40
codegen_flags: <defaults>
</compile_context>

<pallas_src>
import functools

import jax
import jax.numpy as jnp
from jax.experimental import pallas as pl
from jax.experimental.pallas import tpu as pltpu


def _round_up(x, m):
    return ((x + m - 1) // m) * m


def _largest_dividing_tile(total, cap, align):
    """Largest multiple of `align` that divides `total` and is <= cap (or None)."""
    if total % align != 0:
        return None
    cap = max(align, min(cap, total))
    q = total // align
    for d in range(cap // align, 0, -1):
        if q % d == 0:
            return d * align
    return None


@functools.lru_cache(maxsize=1)
def _vmem_capacity_bytes():
    try:
        return int(pltpu.get_tpu_info().vmem_capacity_bytes)
    except Exception:
        return 64 * 1024 * 1024  # conservative fallback (v7x per-TensorCore)


@functools.lru_cache(maxsize=1)
def _blockspec_supports_pipeline_mode():
    try:
        pl.BlockSpec((8, 128), lambda i: (i, 0), pipeline_mode=pl.Buffered(1))
        return True
    except Exception:
        return False


# ---------------------------------------------------------------------------
# Kernels
# ---------------------------------------------------------------------------
def _linear_downsample_kernel(x_ref, w_ref, b_ref, o_ref):
    # x_ref: (TM, Kp) in input dtype, w_ref: (Kp, TN) bf16, b_ref: (1, TN) f32.
    # Cast activations in-kernel (no extra HBM pass in the wrapper).
    x = x_ref[...].astype(jnp.bfloat16)
    acc = jnp.dot(x, w_ref[...], preferred_element_type=jnp.float32)
    o_ref[...] = (acc + b_ref[...]).astype(o_ref.dtype)


def _linear_downsample_kernel_ktiled(x_ref, w_ref, b_ref, o_ref, acc_ref):
    # Accumulator variant for large H: grid = (n, m, k), k innermost ("arbitrary").
    k = pl.program_id(2)

    @pl.when(k == 0)
    def _():
        acc_ref[...] = jnp.zeros_like(acc_ref)

    x = x_ref[...].astype(jnp.bfloat16)
    acc_ref[...] += jnp.dot(x, w_ref[...], preferred_element_type=jnp.float32)

    @pl.when(k == pl.num_programs(2) - 1)
    def _():
        o_ref[...] = (acc_ref[...] + b_ref[...]).astype(o_ref.dtype)


# ---------------------------------------------------------------------------
# Wrapper
# ---------------------------------------------------------------------------
def linear_downsample(hidden_states, weight, bias, *, out_dtype=None,
                      tile_m=None, tile_n=None, tile_k=None,
                      force_k_tiling=False):
    """hidden_states: (B, S, H), weight: (2H, H), bias: (H,) -> (B, S//2, H)."""
    B, S, H = hidden_states.shape
    assert S % 2 == 0, "sequence length must be even for downsample_rate=2"
    K, N = 2 * H, H
    M = B * (S // 2)
    in_dtype = hidden_states.dtype
    out_dtype = jnp.dtype(in_dtype if out_dtype is None else out_dtype)
    in_item = jnp.dtype(in_dtype).itemsize
    out_item = out_dtype.itemsize

    # Lane-dense (128-aligned) contraction / output-feature extents.
    Kp = _round_up(K, 128)
    Np = _round_up(N, 128)

    # ---- per-generation VMEM budgets ----------------------------------------
    vmem_phys = _vmem_capacity_bytes()
    if vmem_phys >= (100 << 20):        # v5e / v6e: 128 MiB VMEM
        budget_x = 16 << 20             # double-buffered activation tiles
        target_total = int(vmem_phys * 0.75)
    else:                               # v7x: 64 MiB per TensorCore
        budget_x = 8 << 20
        target_total = 46 << 20

    # Sublane alignment for the row dim (input/output share dtype class here).
    m_align = 8 if in_item >= 4 else (16 if in_item == 2 else 32)

    # ---- K handling: monolithic K vs. K grid axis + accumulator --------------
    fit_m_full_k = max(m_align, (budget_x // (2 * Kp * in_item)) // m_align * m_align)
    use_k_tiling = bool(force_k_tiling) or (fit_m_full_k < 256 and M >= 256)
    if tile_k is not None:
        tile_k = min(_round_up(tile_k, 128), Kp)
        use_k_tiling = use_k_tiling or (tile_k < Kp)
    if use_k_tiling:
        if tile_k is None:
            tile_k = min(Kp, 512)
        Kpad = _round_up(Kp, tile_k)
        k_tiles = Kpad // tile_k
    else:
        tile_k = Kp
        Kpad = Kp
        k_tiles = 1

    # Weight/bias block index is constant over the inner m loop on the monolithic
    # path -> single-buffer them (saves VMEM, buys a larger tile_n).
    can_single_buffer = (not use_k_tiling) and _blockspec_supports_pipeline_mode()
    w_bufs = 1 if can_single_buffer else 2
    b_bufs = w_bufs

    # ---- tile_m ---------------------------------------------------------------
    if tile_m is None:
        fit = max(m_align, (budget_x // (2 * tile_k * in_item)) // m_align * m_align)
        cap = min(512, fit, _round_up(M, m_align))
        tm = _largest_dividing_tile(M, cap, m_align)
        if tm is not None and 4 * tm >= cap:
            tile_m = tm                      # divides M: no row padding / output slice
        else:
            tile_m = max(m_align, (cap // m_align) * m_align)
    else:
        tile_m = max(m_align, _round_up(tile_m, m_align))
        tile_m = min(tile_m, _round_up(M, m_align))
    Mp = _round_up(M, tile_m)
    m_tiles = Mp // tile_m

    # ---- tile_n (bounded by total resident VMEM) ------------------------------
    if tile_n is None:
        act_bytes = 2 * tile_m * tile_k * in_item
        per_n = (w_bufs * tile_k * 2                       # bf16 weight tile(s)
                 + 2 * tile_m * out_item                   # double-buffered output
                 + (tile_m * 4 if use_k_tiling else 0)     # f32 accumulator
                 + b_bufs * 4)                             # bias
        max_tn = (target_total - act_bytes - (2 << 20)) // per_n
        max_tn = max(128, (max_tn // 128) * 128)
        if Np <= max_tn:
            tile_n = Np                                    # single weight-column pass
        else:
            tn = _largest_dividing_tile(Np, max_tn, 128)
            tile_n = tn if (tn is not None and 2 * tn >= max_tn) else max_tn
    else:
        tile_n = min(_round_up(tile_n, 128), Np)
    Npad = _round_up(Np, tile_n)
    n_tiles = Npad // tile_n

    # ---- glue (zero-copy on the aligned fast path) ----------------------------
    x2d = hidden_states.reshape(M, K)          # contiguous reshape: free, no HBM pass
    if (Mp - M) or (Kpad - K):
        x2d = jnp.pad(x2d, ((0, Mp - M), (0, Kpad - K)))
    w = weight.astype(jnp.bfloat16)            # no-op when caller already stores bf16
    if (Kpad - K) or (Npad - N):
        w = jnp.pad(w, ((0, Kpad - K), (0, Npad - N)))
    b2d = bias.astype(jnp.float32).reshape(1, N)
    if Npad - N:
        b2d = jnp.pad(b2d, ((0, 0), (0, Npad - N)))

    cost = pl.CostEstimate(
        flops=2 * Mp * Kpad * Npad,
        bytes_accessed=(Mp * Kpad * in_item + Kpad * Npad * 2 + Npad * 4
                        + Mp * Npad * out_item),
        transcendentals=0,
    )

    def _run(single_buffer_weight):
        w_b = 1 if single_buffer_weight else 2
        vmem_needed = (
            2 * tile_m * tile_k * in_item
            + w_b * tile_k * tile_n * 2
            + w_b * tile_n * 4
            + 2 * tile_m * tile_n * out_item
            + (tile_m * tile_n * 4 if use_k_tiling else 0)
        )
        vmem_limit = int(min(max(vmem_needed + (8 << 20), 32 << 20),
                             int(vmem_phys * 0.92)))

        if use_k_tiling:
            grid = (n_tiles, m_tiles, k_tiles)
            in_specs = [
                pl.BlockSpec((tile_m, tile_k), lambda j, i, k: (i, k)),
                pl.BlockSpec((tile_k, tile_n), lambda j, i, k: (k, j)),
                pl.BlockSpec((1, tile_n), lambda j, i, k: (0, j)),
            ]
            out_specs = pl.BlockSpec((tile_m, tile_n), lambda j, i, k: (i, j))
            scratch = [pltpu.VMEM((tile_m, tile_n), jnp.float32)]
            kernel = _linear_downsample_kernel_ktiled
            dims = ("parallel", "parallel", "arbitrary")
        else:
            if single_buffer_weight:
                w_spec = pl.BlockSpec((tile_k, tile_n), lambda j, i: (0, j),
                                      pipeline_mode=pl.Buffered(1))
                b_spec = pl.BlockSpec((1, tile_n), lambda j, i: (0, j),
                                      pipeline_mode=pl.Buffered(1))
            else:
                w_spec = pl.BlockSpec((tile_k, tile_n), lambda j, i: (0, j))
                b_spec = pl.BlockSpec((1, tile_n), lambda j, i: (0, j))
            grid = (n_tiles, m_tiles)
            in_specs = [
                pl.BlockSpec((tile_m, tile_k), lambda j, i: (i, 0)),
                w_spec,
                b_spec,
            ]
            out_specs = pl.BlockSpec((tile_m, tile_n), lambda j, i: (i, j))
            scratch = []
            kernel = _linear_downsample_kernel
            dims = ("parallel", "parallel")

        return pl.pallas_call(
            kernel,
            out_shape=jax.ShapeDtypeStruct((Mp, Npad), out_dtype),
            grid_spec=pltpu.PrefetchScalarGridSpec(
                num_scalar_prefetch=0,
                grid=grid,
                in_specs=in_specs,
                out_specs=out_specs,
                scratch_shapes=scratch,
            ),
            compiler_params=pltpu.CompilerParams(
                dimension_semantics=dims,
                vmem_limit_bytes=vmem_limit,
            ),
            cost_estimate=cost,
        )(x2d, w, b2d)

    try:
        out = _run(can_single_buffer)
    except Exception:
        if can_single_buffer:
            out = _run(False)   # safety net: retry with default double-buffering
        else:
            raise

    if (Mp - M) or (Npad - N):
        out = out[:M, :N]
    return out.reshape(B, S // 2, H)


# ---------------------------------------------------------------------------
# Module mirroring Downsample(config) with config.downsample_type == 'linear'
# ---------------------------------------------------------------------------
class DownsamplePallas:
    def __init__(self, hidden_size, key):
        kw, kb = jax.random.split(key)
        fan_in = 2 * hidden_size
        bound = 1.0 / (fan_in ** 0.5)
        # Deterministic synthetic init (uniform, like nn.Linear's bound).
        self.weight = jax.random.uniform(
            kw, (2 * hidden_size, hidden_size), jnp.float32, -bound, bound)
        self.bias = jax.random.uniform(kb, (hidden_size,), jnp.float32, -bound, bound)
        # Cast the weight to bf16 once at init (MXU-native operand dtype).
        self._weight_bf16 = self.weight.astype(jnp.bfloat16)

    @property
    def downsample_rate(self):
        return 2

    def __call__(self, hidden_states):
        # Token-pair concat == contiguous reshape (token 2t features then 2t+1),
        # matching the reference LinearDownsample ordering.
        return linear_downsample(hidden_states, self._weight_bf16, self.bias)


def _reference(hidden_states, weight, bias):
    B, S, H = hidden_states.shape
    x = hidden_states.reshape(B, S // 2, 2 * H)
    return jnp.einsum("bsk,kn->bsn", x, weight) + bias


if __name__ == "__main__":
    key = jax.random.PRNGKey(0)
    k_x, k_p, k_x2, k_p2 = jax.random.split(key, 4)

    # ---- default path (misaligned H exercises the padding glue) ----
    batch, seqlen, hidden = 2, 8, 32
    x = jax.random.normal(k_x, (batch, seqlen, hidden), jnp.float32)
    module = DownsamplePallas(hidden, k_p)
    out = jax.block_until_ready(module(x))
    ref = _reference(x, module.weight, module.bias)
    assert out.shape == (batch, seqlen // 2, hidden), out.shape
    # bf16 matmul operands with f32 accumulation -> bf16-level tolerance.
    assert jnp.allclose(out, ref, atol=3e-2, rtol=3e-2), "mismatch (monolithic-K path)"

    # ---- K-tiled accumulator path, forced at a small aligned shape ----
    batch2, seqlen2, hidden2 = 2, 8, 128
    x2 = jax.random.normal(k_x2, (batch2, seqlen2, hidden2), jnp.float32)
    module2 = DownsamplePallas(hidden2, k_p2)
    out2 = jax.block_until_ready(
        linear_downsample(x2, module2._weight_bf16, module2.bias,
                          tile_k=128, force_k_tiling=True))
    ref2 = _reference(x2, module2.weight, module2.bias)
    assert out2.shape == (batch2, seqlen2 // 2, hidden2), out2.shape
    assert jnp.allclose(out2, ref2, atol=5e-2, rtol=5e-2), "mismatch (K-tiled path)"

    print("KERNEL_OK")
</pallas_src>

<mosaic_0001>
module attributes {stable_mosaic.version = 11 : i64} {
  func.func @_linear_downsample_kernel(%arg0: i32, %arg1: i32, %arg2: memref<8x128xf32, #tpu.memory_space<vmem>>, %arg3: memref<128x128xbf16, #tpu.memory_space<vmem>>, %arg4: memref<1x128xf32, #tpu.memory_space<vmem>>, %arg5: memref<8x128xf32, #tpu.memory_space<vmem>>) attributes {dimension_semantics = [#tpu.dimension_semantics<parallel>, #tpu.dimension_semantics<parallel>], iteration_bounds = array<i64: 1, 1>, scalar_prefetch = 0 : i64, scratch_operands = 0 : i64, tpu.core_type = #tpu.core_type<tc>, window_params = [{transform_indices = @transform_0, window_bounds = array<i64: 8, 128>}, {pipeline_mode = #tpu.pipeline_mode<synchronous>, transform_indices = @transform_1, window_bounds = array<i64: 128, 128>}, {pipeline_mode = #tpu.pipeline_mode<synchronous>, transform_indices = @transform_2, window_bounds = array<i64: 1, 128>}, {transform_indices = @transform_3, window_bounds = array<i64: 8, 128>}]} {
    %c0 = arith.constant 0 : index
    %c0_0 = arith.constant 0 : index
    %0 = vector.load %arg2[%c0, %c0_0] : memref<8x128xf32, #tpu.memory_space<vmem>>, vector<8x128xf32>
    %1 = arith.truncf %0 : vector<8x128xf32> to vector<8x128xbf16>
    %c0_1 = arith.constant 0 : index
    %c0_2 = arith.constant 0 : index
    %2 = vector.load %arg3[%c0_1, %c0_2] : memref<128x128xbf16, #tpu.memory_space<vmem>>, vector<128x128xbf16>
    %cst = arith.constant dense<0.000000e+00> : vector<8x128xf32>
    %3 = tpu.matmul %1, %2, %cst {dimension_numbers = #tpu.dot_dimension_numbers<[1], [0], [0], [1], [0, 0, 1, 1], [], []>} : vector<8x128xbf16>, vector<128x128xbf16>, vector<8x128xf32> -> vector<8x128xf32>
    %c0_3 = arith.constant 0 : index
    %c0_4 = arith.constant 0 : index
    %4 = vector.load %arg4[%c0_3, %c0_4] : memref<1x128xf32, #tpu.memory_space<vmem>>, vector<1x128xf32>
    %5 = vector.broadcast %4 : vector<1x128xf32> to vector<8x128xf32>
    %6 = arith.addf %3, %5 : vector<8x128xf32>
    %c0_5 = arith.constant 0 : index
    %c0_6 = arith.constant 0 : index
    %7 = vector.load %arg5[%c0_5, %c0_6] : memref<8x128xf32, #tpu.memory_space<vmem>>, vector<8x128xf32>
    tpu.vector_store %arg5[%c0_5, %c0_6], %6 {strides = array<i32>} : memref<8x128xf32, #tpu.memory_space<vmem>>, vector<8x128xf32>,
    return
  }
  func.func @transform_0(%arg0: i32, %arg1: i32) -> (i32, i32) {
    %c0_i32 = arith.constant 0 : i32
    %c0_i32_0 = arith.constant 0 : i32
    return %arg1, %c0_i32 : i32, i32
  }
  func.func @transform_1(%arg0: i32, %arg1: i32) -> (i32, i32) {
    %c0_i32 = arith.constant 0 : i32
    %c0_i32_0 = arith.constant 0 : i32
    return %c0_i32, %arg0 : i32, i32
  }
  func.func @transform_2(%arg0: i32, %arg1: i32) -> (i32, i32) {
    %c0_i32 = arith.constant 0 : i32
    %c0_i32_0 = arith.constant 0 : i32
    return %c0_i32, %arg0 : i32, i32
  }
  func.func @transform_3(%arg0: i32, %arg1: i32) -> (i32, i32) {
    %c0_i32 = arith.constant 0 : i32
    return %arg1, %arg0 : i32, i32
  }
}

module attributes {stable_mosaic.version = 11 : i64} {
  func.func @_linear_downsample_kernel(%arg0: i32, %arg1: i32, %arg2: memref<8x128xf32, #tpu.memory_space<vmem>>, %arg3: memref<128x128xbf16, #tpu.memory_space<vmem>>, %arg4: memref<1x128xf32, #tpu.memory_space<vmem>>, %arg5: memref<8x128xf32, #tpu.memory_space<vmem>>) attributes {dimension_semantics = [#tpu.dimension_semantics<parallel>, #tpu.dimension_semantics<parallel>], iteration_bounds = array<i64: 1, 1>, scalar_prefetch = 0 : i64, scratch_operands = 0 : i64, tpu.core_type = #tpu.core_type<tc>, window_params = [{transform_indices = @transform_0, window_bounds = array<i64: 8, 128>}, {transform_indices = @transform_1, window_bounds = array<i64: 128, 128>}, {transform_indices = @transform_2, window_bounds = array<i64: 1, 128>}, {transform_indices = @transform_3, window_bounds = array<i64: 8, 128>}]} {
    %c0 = arith.constant 0 : index
    %c0_0 = arith.constant 0 : index
    %0 = vector.load %arg2[%c0, %c0_0] : memref<8x128xf32, #tpu.memory_space<vmem>>, vector<8x128xf32>
    %1 = arith.truncf %0 : vector<8x128xf32> to vector<8x128xbf16>
    %c0_1 = arith.constant 0 : index
    %c0_2 = arith.constant 0 : index
    %2 = vector.load %arg3[%c0_1, %c0_2] : memref<128x128xbf16, #tpu.memory_space<vmem>>, vector<128x128xbf16>
    %cst = arith.constant dense<0.000000e+00> : vector<8x128xf32>
    %3 = tpu.matmul %1, %2, %cst {dimension_numbers = #tpu.dot_dimension_numbers<[1], [0], [0], [1], [0, 0, 1, 1], [], []>} : vector<8x128xbf16>, vector<128x128xbf16>, vector<8x128xf32> -> vector<8x128xf32>
    %c0_3 = arith.constant 0 : index
    %c0_4 = arith.constant 0 : index
    %4 = vector.load %arg4[%c0_3, %c0_4] : memref<1x128xf32, #tpu.memory_space<vmem>>, vector<1x128xf32>
    %5 = vector.broadcast %4 : vector<1x128xf32> to vector<8x128xf32>
    %6 = arith.addf %3, %5 : vector<8x128xf32>
    %c0_5 = arith.constant 0 : index
    %c0_6 = arith.constant 0 : index
    %7 = vector.load %arg5[%c0_5, %c0_6] : memref<8x128xf32, #tpu.memory_space<vmem>>, vector<8x128xf32>
    tpu.vector_store %arg5[%c0_5, %c0_6], %6 {strides = array<i32>} : memref<8x128xf32, #tpu.memory_space<vmem>>, vector<8x128xf32>,
    return
  }
  func.func @transform_0(%arg0: i32, %arg1: i32) -> (i32, i32) {
    %c0_i32 = arith.constant 0 : i32
    %c0_i32_0 = arith.constant 0 : i32
    return %arg1, %c0_i32 : i32, i32
  }
  func.func @transform_1(%arg0: i32, %arg1: i32) -> (i32, i32) {
    %c0_i32 = arith.constant 0 : i32
    %c0_i32_0 = arith.constant 0 : i32
    return %c0_i32, %arg0 : i32, i32
  }
  func.func @transform_2(%arg0: i32, %arg1: i32) -> (i32, i32) {
    %c0_i32 = arith.constant 0 : i32
    %c0_i32_0 = arith.constant 0 : i32
    return %c0_i32, %arg0 : i32, i32
  }
  func.func @transform_3(%arg0: i32, %arg1: i32) -> (i32, i32) {
    %c0_i32 = arith.constant 0 : i32
    return %arg1, %arg0 : i32, i32
  }
}

</mosaic_0001>

<bundles_post_ra>
// kernel: tpu_custom_call.1
= control target key start
LH: loop header
LB: loop body
LE: loop exit
PB: predicated region body
PF: predicated region fallthrough
CT: control target
= control target key end

     0   :  { %8 = vsyncpa [#allocation3], 0  ;;  %s370_s0 = inlined_call_operand.hbm [shape: f32[8,128], index: 0, kind: input, shape index: {}]   ;;  %s371_s1 = inlined_call_operand.hbm [shape: bf16[128,128], index: 1, kind: input, shape index: {}]   ;;  %s372_s2 = inlined_call_operand.vmem [shape: f32[1,128], index: 2, kind: input, shape index: {}]   ;;  %s373_s3 = inlined_call_operand.hbm [shape: f32[8,128], index: 3, kind: output, shape index: {}]  }
   0x1   :  { %9 = vsyncpa [#allocation6], 0 }
   0x2   :  { %10 = vsyncpa [#allocation4], 0  ;;  %s297_s12 = smov [#allocation2]   ;;  %s298_s14 = smov [#allocation5]  }
   0x3   :  { %s17_s13 = sshll.u32 %s297_s12, 4  ;;  %s26_s15 = sshll.u32 %s298_s14, 4  ;;  %s18_s13 = int_to_ptr.vmem [resolvable:$true] %s17_s13  ;;  %s324_s15 = int_to_ptr.vmem [resolvable:$true] %s26_s15 }
   0x4   :  { %s225_s18 = scalar_lea.hbm %s370_s0, 128 }
   0x5   :  { %p226_p0 = scmp.ne.s32.totalorder %s370_s0, %s225_s18  ;;  %p229_p1 = scmp.lt.u32.totalorder %s225_s18, %s370_s0 }
   0x7   :  { %p231_p2 = pnand %p229_p1, %p226_p0 }
   0x9   :  { %234 = shalt.err (!%p231_p2)
}
   0xa   :  { %s235_s23 = scalar_lea.vmem %s18_s13, 128  ;;  %p240_p4 = scmp.lt.s32.totalorder %s18_s13, %s18_s13 }
   0xb   :  { %p236_p3 = scmp.ne.s32.totalorder %s18_s13, %s235_s23  ;;  %p241_p5 = scmp.lt.s32.totalorder %s235_s23, %s235_s23 }
   0xd   :  { %p242_p6 = por %p241_p5, %p240_p4 }
   0xf   :  { %p243_p7 = pnand %p242_p6, %p236_p3 }
  0x11   :  { %246 = shalt.err (!%p243_p7)
}
  0x12   :  { %20 = dma.hbm_to_vmem [thread:$0]  %s370_s0, 128, %s18_s13, [#allocation3]  }
  0x13   :  { %s247_s28 = scalar_lea.hbm %s371_s1, 1024 }
  0x14   :  { %p248_p8 = scmp.ne.s32.totalorder %s371_s1, %s247_s28  ;;  %p251_p9 = scmp.lt.u32.totalorder %s247_s28, %s371_s1 }
  0x16   :  { %p253_p10 = pnand %p251_p9, %p248_p8 }
  0x18   :  { %256 = shalt.err (!%p253_p10)
}
  0x19   :  { %s257_s6 = scalar_lea.vmem %s324_s15, 1024  ;;  %p262_p12 = scmp.lt.s32.totalorder %s324_s15, %s324_s15 }
  0x1a   :  { %p258_p11 = scmp.ne.s32.totalorder %s324_s15, %s257_s6  ;;  %p263_p13 = scmp.lt.s32.totalorder %s257_s6, %s257_s6 }
  0x1c   :  { %p264_p0 = por %p263_p13, %p262_p12 }
  0x1e   :  { %p265_p1 = pnand %p264_p0, %p258_p11 }
  0x20   :  { %268 = shalt.err (!%p265_p1)
}
  0x21   :  { %s299_s0 = smov 64   ;;  %s300_s7 = smov 4  }
  0x22   :  { %32 = dma.hbm_to_vmem [thread:$0]  %s371_s1, 1024, %s324_s15, [#allocation6], %s299_s0, %s299_s0, %s300_s7  }
  0x23   :  { %291 = dma.done.wait [#allocation3], 128  }
  0x24   :  { %292 = vsyncadd [#allocation3], 4294967168 }
  0x25   :  { %293 = dma.done.wait [#allocation6], 1024  }
  0x26   :  { %294 = vsyncadd [#allocation6], 4294966272  ;;  %v301_v0 = vmov 0.0   ;;  %vm302_vm0 = vmmov 0   ;;  %v217_v1 = vld [vmem:[#allocation5] sm:$0xff]   ;;  %v218_v2 = vld [vmem:[#allocation5 + $0x8] sm:$0xff]  }
  0x27   :  { %190 = vmatprep.subr.bf16.mxu0 %v301_v0  ;;  %206 = vmatprep.mubr.msk.bf16.mxu0 %vm302_vm0, %v301_v0  ;;  %v219_v3 = vld [vmem:[#allocation5 + $0x10] sm:$0xff]   ;;  %v220_v4 = vld [vmem:[#allocation5 + $0x18] sm:$0xff]   ;;  %v221_v5 = vld [vmem:[#allocation5 + $0x20] sm:$0xff]   ;;  %s303_s11 = smov [#allocation7]  }
  0x28   :  { %191 = vmatpush3.bf16.msra.mxu0 %v217_v1  ;;  %v222_v6 = vld [vmem:[#allocation5 + $0x28] sm:$0xff]   ;;  %v223_v7 = vld [vmem:[#allocation5 + $0x30] sm:$0xff]   ;;  %v224_v8 = vld [vmem:[#allocation5 + $0x38] sm:$0xff]   ;;  %s162_s12 = sshll.u32 %s303_s11, 4  ;;  %s163_s12 = int_to_ptr.vmem [resolvable:$true] %s162_s12 }
  0x29   :  { %192 = vmatprep.subr.bf16.mxu0 %v301_v0  ;;  %v42_v9 = vld [vmem:[#allocation2] sm:$0xff]  ;;  %s269_s13 = scalar_lea.vmem %s163_s12, 128  ;;  %p274_p3 = scmp.lt.s32.totalorder %s163_s12, %s163_s12 }
  0x2a   :  { %v43_v10 = vpack.c.bf16 %v42_v9, %v42_v9  ;;  %v172_v11 = vld [vmem:[%s372_s2] ss:$0 sm:$0xff]  ;;  %p270_p2 = scmp.ne.s32.totalorder %s163_s12, %s269_s13  ;;  %p275_p4 = scmp.lt.s32.totalorder %s269_s13, %s269_s13 }
  0x2c   :  { %193 = vmatpush3.bf16.msra.mxu0 %v218_v2  ;;  %p276_p5 = por %p275_p4, %p274_p3 }
  0x2d   :  { %194 = vmatprep.subr.bf16.mxu0 %v301_v0 }
  0x2e   :  { %p277_p6 = pnand %p276_p5, %p270_p2 }
  0x30   :  { %195 = vmatpush3.bf16.msra.mxu0 %v219_v3 }
  0x31   :  { %196 = vmatprep.subr.bf16.mxu0 %v301_v0 }
  0x34   :  { %197 = vmatpush3.bf16.msra.mxu0 %v220_v4 }
  0x35   :  { %198 = vmatprep.subr.bf16.mxu0 %v301_v0 }
  0x38   :  { %199 = vmatpush3.bf16.msra.mxu0 %v221_v5 }
  0x39   :  { %200 = vmatprep.subr.bf16.mxu0 %v301_v0 }
  0x3c   :  { %201 = vmatpush3.bf16.msra.mxu0 %v222_v6 }
  0x3d   :  { %202 = vmatprep.subr.bf16.mxu0 %v301_v0 }
  0x40   :  { %203 = vmatpush3.bf16.msra.mxu0 %v223_v7 }
  0x41   :  { %204 = vmatprep.subr.bf16.mxu0 %v301_v0 }
  0x44   :  { %205 = vmatpush3.bf16.msra.mxu0 %v224_v8 }
  0x47   :  { %207 = vmatmul.mubr.bf16.vlgmr.msra.gmra.mrb[0].mxu0 %v43_v10 }
 0x11a   :  { %v149_v12 = vpop.f32.mrb[0].mxu0 }
 0x11b   :  { %v150_v13 = vadd.f32 %v172_v11, %v149_v12  ;;  %v208_v14 = vpop.f32.mrb[1].mxu0 }
 0x11c   :  { %v152_v15 = vpop.f32.mrb[2].mxu0 }
 0x11d   :  { %155 = vst [vmem:[#allocation7] sm:$0xff] %v150_v13  ;;  %v209_v16 = vpop.f32.mrb[3].mxu0 }
 0x11e   :  { %280 = shalt.err (!%p277_p6)
}
 0x11f   :  { %s281_s2 = scalar_lea.hbm %s373_s3, 128 }
 0x120   :  { %p282_p7 = scmp.ne.s32.totalorder %s373_s3, %s281_s2  ;;  %p285_p8 = scmp.lt.u32.totalorder %s281_s2, %s373_s3 }
 0x122   :  { %p287_p9 = pnand %p285_p8, %p282_p7 }
 0x124   :  { %290 = shalt.err (!%p287_p9)
}
 0x125   :  { %165 = dma.vmem_to_hbm [thread:$0]  %s163_s12, 128, %s373_s3, [#allocation4]  }
 0x126   :  { %295 = dma.done.wait [#allocation4], 128  }
 0x127   :  { %296 = vsyncadd [#allocation4], 4294967168 }
 0x128   :  { %169 = vsyncpa [#allocation3], 1 }
 0x129   :  { %170 = vsyncpa [#allocation6], 1 }
 0x12a   :  { %171 = vsyncpa [#allocation4], 1 }

// kernel: tpu_custom_call.1
= control target key start
LH: loop header
LB: loop body
LE: loop exit
PB: predicated region body
PF: predicated region fallthrough
CT: control target
= control target key end

     0   :  { %8 = vsyncpa [#allocation3], 0  ;;  %s370_s0 = inlined_call_operand.hbm [shape: f32[8,128], index: 0, kind: input, shape index: {}]   ;;  %s371_s1 = inlined_call_operand.hbm [shape: bf16[128,128], index: 1, kind: input, shape index: {}]   ;;  %s372_s2 = inlined_call_operand.vmem [shape: f32[1,128], index: 2, kind: input, shape index: {}]   ;;  %s373_s3 = inlined_call_operand.hbm [shape: f32[8,128], index: 3, kind: output, shape index: {}]  }
   0x1   :  { %9 = vsyncpa [#allocation6], 0 }
   0x2   :  { %10 = vsyncpa [#allocation4], 0  ;;  %s297_s12 = smov [#allocation2]   ;;  %s298_s14 = smov [#allocation5]  }
   0x3   :  { %s17_s13 = sshll.u32 %s297_s12, 4  ;;  %s26_s15 = sshll.u32 %s298_s14, 4  ;;  %s18_s13 = int_to_ptr.vmem [resolvable:$true] %s17_s13  ;;  %s324_s15 = int_to_ptr.vmem [resolvable:$true] %s26_s15 }
   0x4   :  { %s225_s18 = scalar_lea.hbm %s370_s0, 128 }
   0x5   :  { %p226_p0 = scmp.ne.s32.totalorder %s370_s0, %s225_s18  ;;  %p229_p1 = scmp.lt.u32.totalorder %s225_s18, %s370_s0 }
   0x7   :  { %p231_p2 = pnand %p229_p1, %p226_p0 }
   0x9   :  { %234 = shalt.err (!%p231_p2)
}
   0xa   :  { %s235_s23 = scalar_lea.vmem %s18_s13, 128  ;;  %p240_p4 = scmp.lt.s32.totalorder %s18_s13, %s18_s13 }
   0xb   :  { %p236_p3 = scmp.ne.s32.totalorder %s18_s13, %s235_s23  ;;  %p241_p5 = scmp.lt.s32.totalorder %s235_s23, %s235_s23 }
   0xd   :  { %p242_p6 = por %p241_p5, %p240_p4 }
   0xf   :  { %p243_p7 = pnand %p242_p6, %p236_p3 }
  0x11   :  { %246 = shalt.err (!%p243_p7)
}
  0x12   :  { %20 = dma.hbm_to_vmem [thread:$0]  %s370_s0, 128, %s18_s13, [#allocation3]  }
  0x13   :  { %s247_s28 = scalar_lea.hbm %s371_s1, 1024 }
  0x14   :  { %p248_p8 = scmp.ne.s32.totalorder %s371_s1, %s247_s28  ;;  %p251_p9 = scmp.lt.u32.totalorder %s247_s28, %s371_s1 }
  0x16   :  { %p253_p10 = pnand %p251_p9, %p248_p8 }
  0x18   :  { %256 = shalt.err (!%p253_p10)
}
  0x19   :  { %s257_s6 = scalar_lea.vmem %s324_s15, 1024  ;;  %p262_p12 = scmp.lt.s32.totalorder %s324_s15, %s324_s15 }
  0x1a   :  { %p258_p11 = scmp.ne.s32.totalorder %s324_s15, %s257_s6  ;;  %p263_p13 = scmp.lt.s32.totalorder %s257_s6, %s257_s6 }
  0x1c   :  { %p264_p0 = por %p263_p13, %p262_p12 }
  0x1e   :  { %p265_p1 = pnand %p264_p0, %p258_p11 }
  0x20   :  { %268 = shalt.err (!%p265_p1)
}
  0x21   :  { %s299_s0 = smov 64   ;;  %s300_s7 = smov 4  }
  0x22   :  { %32 = dma.hbm_to_vmem [thread:$0]  %s371_s1, 1024, %s324_s15, [#allocation6], %s299_s0, %s299_s0, %s300_s7  }
  0x23   :  { %291 = dma.done.wait [#allocation3], 128  }
  0x24   :  { %292 = vsyncadd [#allocation3], 4294967168 }
  0x25   :  { %293 = dma.done.wait [#allocation6], 1024  }
  0x26   :  { %294 = vsyncadd [#allocation6], 4294966272  ;;  %v301_v0 = vmov 0.0   ;;  %vm302_vm0 = vmmov 0   ;;  %v217_v1 = vld [vmem:[#allocation5] sm:$0xff]   ;;  %v218_v2 = vld [vmem:[#allocation5 + $0x8] sm:$0xff]  }
  0x27   :  { %190 = vmatprep.subr.bf16.mxu0 %v301_v0  ;;  %206 = vmatprep.mubr.msk.bf16.mxu0 %vm302_vm0, %v301_v0  ;;  %v219_v3 = vld [vmem:[#allocation5 + $0x10] sm:$0xff]   ;;  %v220_v4 = vld [vmem:[#allocation5 + $0x18] sm:$0xff]   ;;  %v221_v5 = vld [vmem:[#allocation5 + $0x20] sm:$0xff]   ;;  %s303_s11 = smov [#allocation7]  }
  0x28   :  { %191 = vmatpush3.bf16.msra.mxu0 %v217_v1  ;;  %v222_v6 = vld [vmem:[#allocation5 + $0x28] sm:$0xff]   ;;  %v223_v7 = vld [vmem:[#allocation5 + $0x30] sm:$0xff]   ;;  %v224_v8 = vld [vmem:[#allocation5 + $0x38] sm:$0xff]   ;;  %s162_s12 = sshll.u32 %s303_s11, 4  ;;  %s163_s12 = int_to_ptr.vmem [resolvable:$true] %s162_s12 }
  0x29   :  { %192 = vmatprep.subr.bf16.mxu0 %v301_v0  ;;  %v42_v9 = vld [vmem:[#allocation2] sm:$0xff]  ;;  %s269_s13 = scalar_lea.vmem %s163_s12, 128  ;;  %p274_p3 = scmp.lt.s32.totalorder %s163_s12, %s163_s12 }
  0x2a   :  { %v43_v10 = vpack.c.bf16 %v42_v9, %v42_v9  ;;  %v172_v11 = vld [vmem:[%s372_s2] ss:$0 sm:$0xff]  ;;  %p270_p2 = scmp.ne.s32.totalorder %s163_s12, %s269_s13  ;;  %p275_p4 = scmp.lt.s32.totalorder %s269_s13, %s269_s13 }
  0x2c   :  { %193 = vmatpush3.bf16.msra.mxu0 %v218_v2  ;;  %p276_p5 = por %p275_p4, %p274_p3 }
  0x2d   :  { %194 = vmatprep.subr.bf16.mxu0 %v301_v0 }
  0x2e   :  { %p277_p6 = pnand %p276_p5, %p270_p2 }
  0x30   :  { %195 = vmatpush3.bf16.msra.mxu0 %v219_v3 }
  0x31   :  { %196 = vmatprep.subr.bf16.mxu0 %v301_v0 }
  0x34   :  { %197 = vmatpush3.bf16.msra.mxu0 %v220_v4 }
  0x35   :  { %198 = vmatprep.subr.bf16.mxu0 %v301_v0 }
  0x38   :  { %199 = vmatpush3.bf16.msra.mxu0 %v221_v5 }
  0x39   :  { %200 = vmatprep.subr.bf16.mxu0 %v301_v0 }
  0x3c   :  { %201 = vmatpush3.bf16.msra.mxu0 %v222_v6 }
  0x3d   :  { %202 = vmatprep.subr.bf16.mxu0 %v301_v0 }
  0x40   :  { %203 = vmatpush3.bf16.msra.mxu0 %v223_v7 }
  0x41   :  { %204 = vmatprep.subr.bf16.mxu0 %v301_v0 }
  0x44   :  { %205 = vmatpush3.bf16.msra.mxu0 %v224_v8 }
  0x47   :  { %207 = vmatmul.mubr.bf16.vlgmr.msra.gmra.mrb[0].mxu0 %v43_v10 }
 0x11a   :  { %v149_v12 = vpop.f32.mrb[0].mxu0 }
 0x11b   :  { %v150_v13 = vadd.f32 %v172_v11, %v149_v12  ;;  %v208_v14 = vpop.f32.mrb[1].mxu0 }
 0x11c   :  { %v152_v15 = vpop.f32.mrb[2].mxu0 }
 0x11d   :  { %155 = vst [vmem:[#allocation7] sm:$0xff] %v150_v13  ;;  %v209_v16 = vpop.f32.mrb[3].mxu0 }
 0x11e   :  { %280 = shalt.err (!%p277_p6)
}
 0x11f   :  { %s281_s2 = scalar_lea.hbm %s373_s3, 128 }
 0x120   :  { %p282_p7 = scmp.ne.s32.totalorder %s373_s3, %s281_s2  ;;  %p285_p8 = scmp.lt.u32.totalorder %s281_s2, %s373_s3 }
 0x122   :  { %p287_p9 = pnand %p285_p8, %p282_p7 }
 0x124   :  { %290 = shalt.err (!%p287_p9)
}
 0x125   :  { %165 = dma.vmem_to_hbm [thread:$0]  %s163_s12, 128, %s373_s3, [#allocation4]  }
 0x126   :  { %295 = dma.done.wait [#allocation4], 128  }
 0x127   :  { %296 = vsyncadd [#allocation4], 4294967168 }
 0x128   :  { %169 = vsyncpa [#allocation3], 1 }
 0x129   :  { %170 = vsyncpa [#allocation6], 1 }
 0x12a   :  { %171 = vsyncpa [#allocation4], 1 }

</bundles_post_ra>
